<compile_context>
chip_gen: v7x
topology: tpu7x:2x2x1
jax: 0.10.0
libtpu: 0.0.40
codegen_flags: <defaults>
</compile_context>

<pallas_src>
import functools

import numpy as np
import jax
import jax.numpy as jnp
from jax.experimental import pallas as pl
from jax.experimental.pallas import tpu as pltpu


LEAKY_SLOPE = 0.01        # nn.LeakyReLU default
INSTANCE_NORM_EPS = 1e-5  # nn.InstanceNorm2d default (affine=False, biased var)
LANE = 128
SUBLANE = 8


def _leaky(x):
    return jnp.where(x > 0, x, LEAKY_SLOPE * x)


def _round_up(x, m):
    return ((x + m - 1) // m) * m


def _pad2(a, rows, cols):
    r, c = a.shape
    return jnp.pad(a, ((0, rows - r), (0, cols - c)))


# ---------------------------------------------------------------------------
# Conv layer kernel: fused GEMM (im2col) + bias + LeakyReLU (+ InstanceNorm2d)
# Works in transposed layout (channels x spatial) so spatial is on the lane axis.
# ---------------------------------------------------------------------------
def _conv_stage_kernel(xt_ref, wt_ref, b_ref, o_ref, *, apply_norm):
    x = xt_ref[0]                                                  # (K, S)
    y = jnp.dot(wt_ref[...], x, preferred_element_type=jnp.float32)  # (Cout, S)
    y = y + b_ref[...]                                             # (Cout, 1) broadcast
    y = _leaky(y)
    if apply_norm:
        mu = jnp.mean(y, axis=1, keepdims=True)
        var = jnp.mean(jnp.square(y - mu), axis=1, keepdims=True)
        y = (y - mu) * jax.lax.rsqrt(var + INSTANCE_NORM_EPS)
    o_ref[0] = y.astype(o_ref.dtype)


def _conv_layer(x_nchw, w_hwio, b, *, apply_norm):
    """5x5 VALID conv + LeakyReLU (+ InstanceNorm2d), NCHW in / NCHW out."""
    B, C, H, W = x_nchw.shape
    KH, KW, Cin, Cout = w_hwio.shape
    Ho, Wo = H - KH + 1, W - KW + 1
    S = Ho * Wo
    K = KH * KW * Cin

    # TODO(synk): im2col patch extraction is done in plain JAX (static slices + concat);
    # only the GEMM/activation/norm runs in the Pallas kernel.
    blocks = []
    for dy in range(KH):
        for dx in range(KW):
            blocks.append(x_nchw[:, :, dy:dy + Ho, dx:dx + Wo].reshape(B, C, S))
    patches_t = jnp.concatenate(blocks, axis=1)                    # (B, K, S)

    wt = jnp.transpose(w_hwio, (3, 0, 1, 2)).reshape(Cout, K)      # (Cout, K)
    b2 = b.reshape(Cout, 1)

    out = pl.pallas_call(
        functools.partial(_conv_stage_kernel, apply_norm=apply_norm),
        out_shape=jax.ShapeDtypeStruct((B, Cout, S), jnp.float32),
        grid=(B,),
        in_specs=[
            pl.BlockSpec((1, K, S), lambda i: (i, 0, 0)),
            pl.BlockSpec((Cout, K), lambda i: (0, 0)),
            pl.BlockSpec((Cout, 1), lambda i: (0, 0)),
        ],
        out_specs=pl.BlockSpec((1, Cout, S), lambda i: (i, 0, 0)),
        compiler_params=pltpu.CompilerParams(
            dimension_semantics=("parallel",)),
    )(patches_t, wt, b2)
    return out.reshape(B, Cout, Ho, Wo)


# ---------------------------------------------------------------------------
# Head kernel: AdaptiveAvgPool1d (as matmul) + Linear/LeakyReLU stack + regression.
# All feature dims are padded to multiples of 128 (lane-dense); batch is tiled.
# ---------------------------------------------------------------------------
def _make_head_kernel(num_hidden):
    def kernel(*refs):
        x_ref, pool_ref = refs[0], refs[1]
        o_ref = refs[-1]
        layer_refs = refs[2:-1]
        # AdaptiveAvgPool1d as a matmul with a static pooling matrix.
        h = jnp.dot(x_ref[...], pool_ref[...], preferred_element_type=jnp.float32)
        for li in range(num_hidden):
            w = layer_refs[2 * li][...]
            b = layer_refs[2 * li + 1][...]
            h = _leaky(jnp.dot(h, w, preferred_element_type=jnp.float32) + b)
            # TODO(synk): Dropout1d is identity in eval mode; training-mode dropout omitted.
        w = layer_refs[-2][...]
        b = layer_refs[-1][...]
        out = jnp.dot(h, w, preferred_element_type=jnp.float32) + b
        o_ref[...] = out.astype(o_ref.dtype)
    return kernel


def _adaptive_avg_pool_matrix(length, out_size):
    """(L, out) matrix implementing PyTorch AdaptiveAvgPool1d(out_size)."""
    P = np.zeros((length, out_size), np.float32)
    for j in range(out_size):
        start = (j * length) // out_size
        end = -((-(j + 1) * length) // out_size)   # ceil((j+1)*L/out)
        P[start:end, j] = 1.0 / (end - start)
    return jnp.asarray(P)


def _head_forward(flat, pool_mat, lin_ws, lin_bs, w_out, b_out, *, batch_tile):
    B, L = flat.shape
    d0 = pool_mat.shape[1]
    action_dim = w_out.shape[1]
    n_hid = len(lin_ws)

    dims = [d0] + [w.shape[1] for w in lin_ws] + [action_dim]
    pdims = [_round_up(d, LANE) for d in dims]      # lane-dense feature dims

    operands = [_pad2(pool_mat, L, pdims[0])]
    spec_shapes = [(L, pdims[0])]
    for li in range(n_hid):
        operands.append(_pad2(lin_ws[li], pdims[li], pdims[li + 1]))
        operands.append(_pad2(lin_bs[li].reshape(1, -1), 1, pdims[li + 1]))
        spec_shapes += [(pdims[li], pdims[li + 1]), (1, pdims[li + 1])]
    operands.append(_pad2(w_out, pdims[-2], pdims[-1]))
    operands.append(_pad2(b_out.reshape(1, -1), 1, pdims[-1]))
    spec_shapes += [(pdims[-2], pdims[-1]), (1, pdims[-1])]

    # Batch tiling: large, sublane-aligned tiles (multiple of 128 for big batches on v5e).
    bt = min(batch_tile, _round_up(B, SUBLANE))
    bt = _round_up(bt, SUBLANE)
    Bp = _round_up(B, bt)
    flat_p = jnp.pad(flat, ((0, Bp - B), (0, 0)))
    grid = (Bp // bt,)

    in_specs = [pl.BlockSpec((bt, L), lambda i: (i, 0))]
    in_specs += [pl.BlockSpec(s, lambda i: (0, 0)) for s in spec_shapes]
    out_spec = pl.BlockSpec((bt, pdims[-1]), lambda i: (i, 0))

    flops = 2 * Bp * L * pdims[0]
    for a, c in zip(pdims[:-1], pdims[1:]):
        flops += 2 * Bp * a * c
    bytes_accessed = 4 * (flat_p.size + Bp * pdims[-1] + sum(int(o.size) for o in operands))

    out = pl.pallas_call(
        _make_head_kernel(n_hid),
        out_shape=jax.ShapeDtypeStruct((Bp, pdims[-1]), jnp.float32),
        grid=grid,
        in_specs=in_specs,
        out_specs=out_spec,
        compiler_params=pltpu.CompilerParams(
            dimension_semantics=("parallel",)),
        cost_estimate=pl.CostEstimate(
            flops=int(flops), transcendentals=0, bytes_accessed=int(bytes_accessed)),
    )(flat_p, *operands)
    return out[:B, :action_dim]


# ---------------------------------------------------------------------------
# Full forward pass
# ---------------------------------------------------------------------------
@functools.partial(jax.jit, static_argnames=("batch_tile",))
def conv_quality_estimator_forward(state, params, *, batch_tile=256):
    """state: (B, Cin, H, W) float32 -> (B, action_dim) float32 (eval mode)."""
    x = state
    n_conv = len(params["conv_w"])
    for i in range(n_conv):
        x = _conv_layer(x, params["conv_w"][i], params["conv_b"][i],
                        apply_norm=(i > 0))
    B, C, Ho, Wo = x.shape
    flat = x.reshape(B, C * Ho * Wo)          # channel-major flatten == torch Flatten on NCHW

    d0 = params["lin_w"][0].shape[0] if params["lin_w"] else params["out_w"].shape[0]
    pool_mat = _adaptive_avg_pool_matrix(flat.shape[1], d0)
    return _head_forward(flat, pool_mat, params["lin_w"], params["lin_b"],
                         params["out_w"], params["out_b"], batch_tile=batch_tile)


# ---------------------------------------------------------------------------
# Params init (mimics torch defaults: U(-1/sqrt(fan_in), 1/sqrt(fan_in)))
# ---------------------------------------------------------------------------
def init_params(key, in_channels, action_dim, hid_channel, hid_dims, kernel=5):
    params = {"conv_w": [], "conv_b": [], "lin_w": [], "lin_b": []}
    cin = in_channels
    for cout in hid_channel:
        key, kw, kb = jax.random.split(key, 3)
        bound = 1.0 / np.sqrt(cin * kernel * kernel)
        params["conv_w"].append(jax.random.uniform(
            kw, (kernel, kernel, cin, cout), jnp.float32, -bound, bound))
        params["conv_b"].append(jax.random.uniform(
            kb, (cout,), jnp.float32, -bound, bound))
        cin = cout
    dims = list(hid_dims)
    for i in range(1, len(dims)):
        key, kw, kb = jax.random.split(key, 3)
        bound = 1.0 / np.sqrt(dims[i - 1])
        params["lin_w"].append(jax.random.uniform(
            kw, (dims[i - 1], dims[i]), jnp.float32, -bound, bound))
        params["lin_b"].append(jax.random.uniform(
            kb, (1, dims[i]), jnp.float32, -bound, bound))
    key, kw, kb = jax.random.split(key, 3)
    bound = 1.0 / np.sqrt(dims[-1])
    params["out_w"] = jax.random.uniform(
        kw, (dims[-1], action_dim), jnp.float32, -bound, bound)
    params["out_b"] = jax.random.uniform(
        kb, (1, action_dim), jnp.float32, -bound, bound)
    return params


# ---------------------------------------------------------------------------
# Pure-JAX reference (eval-mode PyTorch semantics) for correctness checking
# ---------------------------------------------------------------------------
def reference_forward(state, params, hid_dims):
    hp = jax.lax.Precision.HIGHEST
    x = state
    for i in range(len(params["conv_w"])):
        x = jax.lax.conv_general_dilated(
            x, params["conv_w"][i], window_strides=(1, 1), padding="VALID",
            dimension_numbers=("NCHW", "HWIO", "NCHW"), precision=hp)
        x = x + params["conv_b"][i].reshape(1, -1, 1, 1)
        x = jnp.where(x > 0, x, LEAKY_SLOPE * x)
        if i > 0:
            mu = jnp.mean(x, axis=(2, 3), keepdims=True)
            var = jnp.mean(jnp.square(x - mu), axis=(2, 3), keepdims=True)
            x = (x - mu) * jax.lax.rsqrt(var + INSTANCE_NORM_EPS)
    B = x.shape[0]
    flat = x.reshape(B, -1)
    P = _adaptive_avg_pool_matrix(flat.shape[1], hid_dims[0])
    h = jnp.dot(flat, P, precision=hp)
    for w, b in zip(params["lin_w"], params["lin_b"]):
        h = jnp.dot(h, w, precision=hp) + b
        h = jnp.where(h > 0, h, LEAKY_SLOPE * h)
    return jnp.dot(h, params["out_w"], precision=hp) + params["out_b"]


if __name__ == "__main__":
    # Small shapes consistent with the module.
    in_channels, action_dim = 4, 4
    hid_channel = [8, 8]       # two conv blocks (second has InstanceNorm2d)
    hid_dims = [32, 32]        # pool to 32, one hidden Linear, regression to action_dim
    batch, H, W = 4, 16, 16    # 16x16 -> 12x12 -> 8x8 spatial

    key = jax.random.PRNGKey(0)
    key, k_state = jax.random.split(key)
    state = jax.random.normal(k_state, (batch, in_channels, H, W), jnp.float32)
    params = init_params(key, in_channels, action_dim, hid_channel, hid_dims)

    out = conv_quality_estimator_forward(state, params)
    out = jax.block_until_ready(out)

    ref = reference_forward(state, params, hid_dims)
    assert out.shape == (batch, action_dim)
    assert jnp.allclose(out, ref, atol=1e-3, rtol=1e-3), "mismatch vs reference"

    print("KERNEL_OK")
</pallas_src>

<mosaic_0001>
module attributes {stable_mosaic.version = 11 : i64} {
  func.func @_conv_stage_kernel(%arg0: i32, %arg1: memref<1x100x144xf32, #tpu.memory_space<vmem>>, %arg2: memref<8x100xf32, #tpu.memory_space<vmem>>, %arg3: memref<8x1xf32, #tpu.memory_space<vmem>>, %arg4: memref<1x8x144xf32, #tpu.memory_space<vmem>>) attributes {dimension_semantics = [#tpu.dimension_semantics<parallel>], iteration_bounds = array<i64: 4>, scalar_prefetch = 0 : i64, scratch_operands = 0 : i64, tpu.core_type = #tpu.core_type<tc>, window_params = [{transform_indices = @transform_0, window_bounds = array<i64: 1, 100, 144>}, {pipeline_mode = #tpu.pipeline_mode<synchronous>, transform_indices = @transform_1, window_bounds = array<i64: 8, 100>}, {pipeline_mode = #tpu.pipeline_mode<synchronous>, transform_indices = @transform_2, window_bounds = array<i64: 8, 1>}, {transform_indices = @transform_3, window_bounds = array<i64: 1, 8, 144>}]} {
    %c0 = arith.constant 0 : index
    %c0_0 = arith.constant 0 : index
    %c0_1 = arith.constant 0 : index
    %0 = vector.load %arg1[%c0, %c0_0, %c0_1] : memref<1x100x144xf32, #tpu.memory_space<vmem>>, vector<1x100x144xf32>
    %1 = vector.shape_cast %0 : vector<1x100x144xf32> to vector<100x144xf32>
    %c0_2 = arith.constant 0 : index
    %c0_3 = arith.constant 0 : index
    %2 = vector.load %arg2[%c0_2, %c0_3] : memref<8x100xf32, #tpu.memory_space<vmem>>, vector<8x100xf32>
    %cst = arith.constant dense<0.000000e+00> : vector<8x144xf32>
    %3 = tpu.matmul %2, %1, %cst {dimension_numbers = #tpu.dot_dimension_numbers<[1], [0], [0], [1], [0, 0, 1, 1], [], []>} : vector<8x100xf32>, vector<100x144xf32>, vector<8x144xf32> -> vector<8x144xf32>
    %c0_4 = arith.constant 0 : index
    %c0_5 = arith.constant 0 : index
    %4 = vector.load %arg3[%c0_4, %c0_5] : memref<8x1xf32, #tpu.memory_space<vmem>>, vector<8x1xf32>
    %5 = vector.broadcast %4 : vector<8x1xf32> to vector<8x144xf32>
    %6 = arith.addf %3, %5 : vector<8x144xf32>
    %cst_6 = arith.constant 0.000000e+00 : f32
    %7 = vector.broadcast %cst_6 : f32 to vector<8x144xf32>
    %8 = arith.cmpf ogt, %6, %7 : vector<8x144xf32>
    %cst_7 = arith.constant 0.00999999977 : f32
    %9 = vector.broadcast %cst_7 : f32 to vector<8x144xf32>
    %10 = arith.mulf %9, %6 : vector<8x144xf32>
    %11 = arith.select %8, %6, %10 : vector<8x144xi1>, vector<8x144xf32>
    %c0_8 = arith.constant 0 : index
    %c0_9 = arith.constant 0 : index
    %c0_10 = arith.constant 0 : index
    %12 = vector.load %arg4[%c0_8, %c0_9, %c0_10] : memref<1x8x144xf32, #tpu.memory_space<vmem>>, vector<1x8x144xf32>
    %13 = vector.shape_cast %12 : vector<1x8x144xf32> to vector<8x144xf32>
    %14 = vector.shape_cast %11 : vector<8x144xf32> to vector<1x8x144xf32>
    tpu.vector_store %arg4[%c0_8, %c0_9, %c0_10], %14 {strides = array<i32>} : memref<1x8x144xf32, #tpu.memory_space<vmem>>, vector<1x8x144xf32>,
    return
  }
  func.func @transform_0(%arg0: i32) -> (i32, i32, i32) {
    %c0_i32 = arith.constant 0 : i32
    %c0_i32_0 = arith.constant 0 : i32
    %c0_i32_1 = arith.constant 0 : i32
    return %arg0, %c0_i32, %c0_i32_0 : i32, i32, i32
  }
  func.func @transform_1(%arg0: i32) -> (i32, i32) {
    %c0_i32 = arith.constant 0 : i32
    %c0_i32_0 = arith.constant 0 : i32
    %c0_i32_1 = arith.constant 0 : i32
    return %c0_i32, %c0_i32_0 : i32, i32
  }
  func.func @transform_2(%arg0: i32) -> (i32, i32) {
    %c0_i32 = arith.constant 0 : i32
    %c0_i32_0 = arith.constant 0 : i32
    %c0_i32_1 = arith.constant 0 : i32
    return %c0_i32, %c0_i32_0 : i32, i32
  }
  func.func @transform_3(%arg0: i32) -> (i32, i32, i32) {
    %c0_i32 = arith.constant 0 : i32
    %c0_i32_0 = arith.constant 0 : i32
    %c0_i32_1 = arith.constant 0 : i32
    return %arg0, %c0_i32, %c0_i32_0 : i32, i32, i32
  }
}

module attributes {stable_mosaic.version = 11 : i64} {
  func.func @kernel(%arg0: i32, %arg1: memref<8x512xf32, #tpu.memory_space<vmem>>, %arg2: memref<512x128xf32, #tpu.memory_space<vmem>>, %arg3: memref<128x128xf32, #tpu.memory_space<vmem>>, %arg4: memref<1x128xf32, #tpu.memory_space<vmem>>, %arg5: memref<128x128xf32, #tpu.memory_space<vmem>>, %arg6: memref<1x128xf32, #tpu.memory_space<vmem>>, %arg7: memref<8x128xf32, #tpu.memory_space<vmem>>) attributes {dimension_semantics = [#tpu.dimension_semantics<parallel>], iteration_bounds = array<i64: 1>, scalar_prefetch = 0 : i64, scratch_operands = 0 : i64, tpu.core_type = #tpu.core_type<tc>, window_params = [{transform_indices = @transform_0, window_bounds = array<i64: 8, 512>}, {pipeline_mode = #tpu.pipeline_mode<synchronous>, transform_indices = @transform_1, window_bounds = array<i64: 512, 128>}, {pipeline_mode = #tpu.pipeline_mode<synchronous>, transform_indices = @transform_2, window_bounds = array<i64: 128, 128>}, {pipeline_mode = #tpu.pipeline_mode<synchronous>, transform_indices = @transform_3, window_bounds = array<i64: 1, 128>}, {pipeline_mode = #tpu.pipeline_mode<synchronous>, transform_indices = @transform_4, window_bounds = array<i64: 128, 128>}, {pipeline_mode = #tpu.pipeline_mode<synchronous>, transform_indices = @transform_5, window_bounds = array<i64: 1, 128>}, {transform_indices = @transform_6, window_bounds = array<i64: 8, 128>}]} {
    %c0 = arith.constant 0 : index
    %c0_0 = arith.constant 0 : index
    %0 = vector.load %arg1[%c0, %c0_0] : memref<8x512xf32, #tpu.memory_space<vmem>>, vector<8x512xf32>
    %c0_1 = arith.constant 0 : index
    %c0_2 = arith.constant 0 : index
    %1 = vector.load %arg2[%c0_1, %c0_2] : memref<512x128xf32, #tpu.memory_space<vmem>>, vector<512x128xf32>
    %cst = arith.constant dense<0.000000e+00> : vector<8x128xf32>
    %2 = tpu.matmul %0, %1, %cst {dimension_numbers = #tpu.dot_dimension_numbers<[1], [0], [0], [1], [0, 0, 1, 1], [], []>} : vector<8x512xf32>, vector<512x128xf32>, vector<8x128xf32> -> vector<8x128xf32>
    %c0_3 = arith.constant 0 : index
    %c0_4 = arith.constant 0 : index
    %3 = vector.load %arg3[%c0_3, %c0_4] : memref<128x128xf32, #tpu.memory_space<vmem>>, vector<128x128xf32>
    %c0_5 = arith.constant 0 : index
    %c0_6 = arith.constant 0 : index
    %4 = vector.load %arg4[%c0_5, %c0_6] : memref<1x128xf32, #tpu.memory_space<vmem>>, vector<1x128xf32>
    %cst_7 = arith.constant dense<0.000000e+00> : vector<8x128xf32>
    %5 = tpu.matmul %2, %3, %cst_7 {dimension_numbers = #tpu.dot_dimension_numbers<[1], [0], [0], [1], [0, 0, 1, 1], [], []>} : vector<8x128xf32>, vector<128x128xf32>, vector<8x128xf32> -> vector<8x128xf32>
    %6 = vector.broadcast %4 : vector<1x128xf32> to vector<8x128xf32>
    %7 = arith.addf %5, %6 : vector<8x128xf32>
    %cst_8 = arith.constant 0.000000e+00 : f32
    %8 = vector.broadcast %cst_8 : f32 to vector<8x128xf32>
    %9 = arith.cmpf ogt, %7, %8 : vector<8x128xf32>
    %cst_9 = arith.constant 0.00999999977 : f32
    %10 = vector.broadcast %cst_9 : f32 to vector<8x128xf32>
    %11 = arith.mulf %10, %7 : vector<8x128xf32>
    %12 = arith.select %9, %7, %11 : vector<8x128xi1>, vector<8x128xf32>
    %c0_10 = arith.constant 0 : index
    %c0_11 = arith.constant 0 : index
    %13 = vector.load %arg5[%c0_10, %c0_11] : memref<128x128xf32, #tpu.memory_space<vmem>>, vector<128x128xf32>
    %c0_12 = arith.constant 0 : index
    %c0_13 = arith.constant 0 : index
    %14 = vector.load %arg6[%c0_12, %c0_13] : memref<1x128xf32, #tpu.memory_space<vmem>>, vector<1x128xf32>
    %cst_14 = arith.constant dense<0.000000e+00> : vector<8x128xf32>
    %15 = tpu.matmul %12, %13, %cst_14 {dimension_numbers = #tpu.dot_dimension_numbers<[1], [0], [0], [1], [0, 0, 1, 1], [], []>} : vector<8x128xf32>, vector<128x128xf32>, vector<8x128xf32> -> vector<8x128xf32>
    %16 = vector.broadcast %14 : vector<1x128xf32> to vector<8x128xf32>
    %17 = arith.addf %15, %16 : vector<8x128xf32>
    %c0_15 = arith.constant 0 : index
    %c0_16 = arith.constant 0 : index
    %18 = vector.load %arg7[%c0_15, %c0_16] : memref<8x128xf32, #tpu.memory_space<vmem>>, vector<8x128xf32>
    tpu.vector_store %arg7[%c0_15, %c0_16], %17 {strides = array<i32>} : memref<8x128xf32, #tpu.memory_space<vmem>>, vector<8x128xf32>,
    return
  }
  func.func @transform_0(%arg0: i32) -> (i32, i32) {
    %c0_i32 = arith.constant 0 : i32
    %c0_i32_0 = arith.constant 0 : i32
    return %arg0, %c0_i32 : i32, i32
  }
  func.func @transform_1(%arg0: i32) -> (i32, i32) {
    %c0_i32 = arith.constant 0 : i32
    %c0_i32_0 = arith.constant 0 : i32
    %c0_i32_1 = arith.constant 0 : i32
    return %c0_i32, %c0_i32_0 : i32, i32
  }
  func.func @transform_2(%arg0: i32) -> (i32, i32) {
    %c0_i32 = arith.constant 0 : i32
    %c0_i32_0 = arith.constant 0 : i32
    %c0_i32_1 = arith.constant 0 : i32
    return %c0_i32, %c0_i32_0 : i32, i32
  }
  func.func @transform_3(%arg0: i32) -> (i32, i32) {
    %c0_i32 = arith.constant 0 : i32
    %c0_i32_0 = arith.constant 0 : i32
    %c0_i32_1 = arith.constant 0 : i32
    return %c0_i32, %c0_i32_0 : i32, i32
  }
  func.func @transform_4(%arg0: i32) -> (i32, i32) {
    %c0_i32 = arith.constant 0 : i32
    %c0_i32_0 = arith.constant 0 : i32
    %c0_i32_1 = arith.constant 0 : i32
    return %c0_i32, %c0_i32_0 : i32, i32
  }
  func.func @transform_5(%arg0: i32) -> (i32, i32) {
    %c0_i32 = arith.constant 0 : i32
    %c0_i32_0 = arith.constant 0 : i32
    %c0_i32_1 = arith.constant 0 : i32
    return %c0_i32, %c0_i32_0 : i32, i32
  }
  func.func @transform_6(%arg0: i32) -> (i32, i32) {
    %c0_i32 = arith.constant 0 : i32
    %c0_i32_0 = arith.constant 0 : i32
    return %arg0, %c0_i32 : i32, i32
  }
}

module attributes {stable_mosaic.version = 11 : i64} {
  func.func @_conv_stage_kernel(%arg0: i32, %arg1: memref<1x200x64xf32, #tpu.memory_space<vmem>>, %arg2: memref<8x200xf32, #tpu.memory_space<vmem>>, %arg3: memref<8x1xf32, #tpu.memory_space<vmem>>, %arg4: memref<1x8x64xf32, #tpu.memory_space<vmem>>) attributes {dimension_semantics = [#tpu.dimension_semantics<parallel>], iteration_bounds = array<i64: 4>, scalar_prefetch = 0 : i64, scratch_operands = 0 : i64, tpu.core_type = #tpu.core_type<tc>, window_params = [{transform_indices = @transform_0, window_bounds = array<i64: 1, 200, 64>}, {pipeline_mode = #tpu.pipeline_mode<synchronous>, transform_indices = @transform_1, window_bounds = array<i64: 8, 200>}, {pipeline_mode = #tpu.pipeline_mode<synchronous>, transform_indices = @transform_2, window_bounds = array<i64: 8, 1>}, {transform_indices = @transform_3, window_bounds = array<i64: 1, 8, 64>}]} {
    %c0 = arith.constant 0 : index
    %c0_0 = arith.constant 0 : index
    %c0_1 = arith.constant 0 : index
    %0 = vector.load %arg1[%c0, %c0_0, %c0_1] : memref<1x200x64xf32, #tpu.memory_space<vmem>>, vector<1x200x64xf32>
    %1 = vector.shape_cast %0 : vector<1x200x64xf32> to vector<200x64xf32>
    %c0_2 = arith.constant 0 : index
    %c0_3 = arith.constant 0 : index
    %2 = vector.load %arg2[%c0_2, %c0_3] : memref<8x200xf32, #tpu.memory_space<vmem>>, vector<8x200xf32>
    %cst = arith.constant dense<0.000000e+00> : vector<8x64xf32>
    %3 = tpu.matmul %2, %1, %cst {dimension_numbers = #tpu.dot_dimension_numbers<[1], [0], [0], [1], [0, 0, 1, 1], [], []>} : vector<8x200xf32>, vector<200x64xf32>, vector<8x64xf32> -> vector<8x64xf32>
    %c0_4 = arith.constant 0 : index
    %c0_5 = arith.constant 0 : index
    %4 = vector.load %arg3[%c0_4, %c0_5] : memref<8x1xf32, #tpu.memory_space<vmem>>, vector<8x1xf32>
    %5 = vector.broadcast %4 : vector<8x1xf32> to vector<8x64xf32>
    %6 = arith.addf %3, %5 : vector<8x64xf32>
    %cst_6 = arith.constant 0.000000e+00 : f32
    %7 = vector.broadcast %cst_6 : f32 to vector<8x64xf32>
    %8 = arith.cmpf ogt, %6, %7 : vector<8x64xf32>
    %cst_7 = arith.constant 0.00999999977 : f32
    %9 = vector.broadcast %cst_7 : f32 to vector<8x64xf32>
    %10 = arith.mulf %9, %6 : vector<8x64xf32>
    %11 = arith.select %8, %6, %10 : vector<8x64xi1>, vector<8x64xf32>
    %cst_8 = arith.constant dense<0.000000e+00> : vector<8xf32>
    %12 = vector.multi_reduction <add>, %11, %cst_8 [1] : vector<8x64xf32> to vector<8xf32>
    %13 = vector.shape_cast %12 : vector<8xf32> to vector<8x1xf32>
    %cst_9 = arith.constant 6.400000e+01 : f32
    %14 = vector.broadcast %cst_9 : f32 to vector<8x1xf32>
    %15 = arith.divf %13, %14 : vector<8x1xf32>
    %16 = vector.broadcast %15 : vector<8x1xf32> to vector<8x64xf32>
    %17 = arith.subf %11, %16 : vector<8x64xf32>
    %18 = arith.mulf %17, %17 : vector<8x64xf32>
    %cst_10 = arith.constant dense<0.000000e+00> : vector<8xf32>
    %19 = vector.multi_reduction <add>, %18, %cst_10 [1] : vector<8x64xf32> to vector<8xf32>
    %20 = vector.shape_cast %19 : vector<8xf32> to vector<8x1xf32>
    %cst_11 = arith.constant 6.400000e+01 : f32
    %21 = vector.broadcast %cst_11 : f32 to vector<8x1xf32>
    %22 = arith.divf %20, %21 : vector<8x1xf32>
    %23 = vector.broadcast %15 : vector<8x1xf32> to vector<8x64xf32>
    %24 = arith.subf %11, %23 : vector<8x64xf32>
    %cst_12 = arith.constant 9.99999974E-6 : f32
    %25 = vector.broadcast %cst_12 : f32 to vector<8x1xf32>
    %26 = arith.addf %22, %25 : vector<8x1xf32>
    %27 = math.rsqrt %26 : vector<8x1xf32>
    %28 = vector.broadcast %27 : vector<8x1xf32> to vector<8x64xf32>
    %29 = arith.mulf %24, %28 : vector<8x64xf32>
    %c0_13 = arith.constant 0 : index
    %c0_14 = arith.constant 0 : index
    %c0_15 = arith.constant 0 : index
    %30 = vector.load %arg4[%c0_13, %c0_14, %c0_15] : memref<1x8x64xf32, #tpu.memory_space<vmem>>, vector<1x8x64xf32>
    %31 = vector.shape_cast %30 : vector<1x8x64xf32> to vector<8x64xf32>
    %32 = vector.shape_cast %29 : vector<8x64xf32> to vector<1x8x64xf32>
    tpu.vector_store %arg4[%c0_13, %c0_14, %c0_15], %32 {strides = array<i32>} : memref<1x8x64xf32, #tpu.memory_space<vmem>>, vector<1x8x64xf32>,
    return
  }
  func.func @transform_0(%arg0: i32) -> (i32, i32, i32) {
    %c0_i32 = arith.constant 0 : i32
    %c0_i32_0 = arith.constant 0 : i32
    %c0_i32_1 = arith.constant 0 : i32
    return %arg0, %c0_i32, %c0_i32_0 : i32, i32, i32
  }
  func.func @transform_1(%arg0: i32) -> (i32, i32) {
    %c0_i32 = arith.constant 0 : i32
    %c0_i32_0 = arith.constant 0 : i32
    %c0_i32_1 = arith.constant 0 : i32
    return %c0_i32, %c0_i32_0 : i32, i32
  }
  func.func @transform_2(%arg0: i32) -> (i32, i32) {
    %c0_i32 = arith.constant 0 : i32
    %c0_i32_0 = arith.constant 0 : i32
    %c0_i32_1 = arith.constant 0 : i32
    return %c0_i32, %c0_i32_0 : i32, i32
  }
  func.func @transform_3(%arg0: i32) -> (i32, i32, i32) {
    %c0_i32 = arith.constant 0 : i32
    %c0_i32_0 = arith.constant 0 : i32
    %c0_i32_1 = arith.constant 0 : i32
    return %arg0, %c0_i32, %c0_i32_0 : i32, i32, i32
  }
}

</mosaic_0001>

<bundles_post_ra>
// kernel: conv_quality_estimator_forward.3
= control target key start
LH: loop header
LB: loop body
LE: loop exit
PB: predicated region body
PF: predicated region fallthrough
CT: control target
= control target key end

     0   :  { %s430_s12 = smov 0   ;;  %s485_s0 = inlined_call_operand.vmem [shape: f32[4,100,144], index: 0, kind: input, shape index: {}]   ;;  %s486_s1 = inlined_call_operand.vmem [shape: f32[8,100], index: 1, kind: input, shape index: {}]   ;;  %s487_s2 = inlined_call_operand.vmem [shape: f32[8,1], index: 2, kind: input, shape index: {}]   ;;  %s488_s3 = inlined_call_operand.vmem [shape: f32[4,8,144], index: 3, kind: output, shape index: {}]  }
   0x1 LB: > { %s350_s13 = sadd.s32 4294967295, %s406_s12   ;;  %p354_p0 = scmp.ge.s32.totalorder %s406_s12, 1  ;;  %s406_s12 = sphi %s430_s12, %s13_s12  }
   0x2   : > { %p137_p1 = scmp.lt.s32.totalorder %s406_s12, 5 }
   0x4   : > { %p138_p2 = pnand %p354_p0, %p137_p1 }
   0x5   : > { %p161_p3 = scmp.lt.s32.totalorder (!%p138_p2), %s350_s13, 3  ;;  %v408_v0 = vmov (!%p138_p2), 0.0   ;;  %v409_v1 = vmov (!%p138_p2), 0   ;;  %v198_v2 = vld [vmem:[%s487_s2] sm:$0xff] (!%p138_p2)  ;;  %vm208_vm0 = vcmask (!%p138_p2), 1043456   ;;  %vm204_vm1 = vcmask (!%p138_p2), 818176  }
   0x6   : > { %141 = sbr.rel (%p138_p2) target bundleno = 265 (0x109), region = 32  ;;  %279 = vmatprep.mubr.f32.mxu0 (!%p138_p2), %v408_v0  ;;  %399 = vset.pattern.permute.xlu0 (!%p138_p2), %v409_v1  ;;  %v197_v41 = vld [vmem:[%s486_s1] sm:$0xff] (!%p138_p2)  ;;  %vm293_vm4 = vcmask (!%p138_p2), 130048  }
   0x7   : > { %201 = vperm.xlu0 (!%p138_p2), %399, %v198_v2  }
   0xd   : > { %s490_s13 = smov (!%p161_p3, %s350_s13), 3 }
   0xe   : > { %s388_s16 = smul.u32 208, %s490_s13  ;;  %s363_s22 = sshll.u32 %s490_s13, 4 }
   0xf   : > { %s170_s25 = scalar_lea.vmem %s488_s3, %s363_s22 }
  0x10   : > { %s447_s19 = scalar_lea.vmem %s485_s0, %s388_s16 }
  0x11   : > { %v172_v3 = vld [vmem:[%s447_s19 + $0x8] sm:$0xff]  ;;  %v174_v4 = vld [vmem:[%s447_s19 + $0x18] sm:$0xff]  ;;  %v171_v5 = vld [vmem:[%s447_s19] sm:$0xff] }
  0x12   : > { %v364_v6 = vpack.c.bf16 %v174_v4, %v172_v3  ;;  %v173_v7 = vld [vmem:[%s447_s19 + $0x10] sm:$0xff]  ;;  %v176_v8 = vld [vmem:[%s447_s19 + $0x28] sm:$0xff]  ;;  %v178_v9 = vld [vmem:[%s447_s19 + $0x38] sm:$0xff] }
  0x13   : > { %v366_v10 = vpack.c.bf16 %v173_v7, %v171_v5  ;;  %v368_v11 = vpack.c.bf16 %v178_v9, %v176_v8  ;;  %v175_v12 = vld [vmem:[%s447_s19 + $0x20] sm:$0xff]  ;;  %v177_v13 = vld [vmem:[%s447_s19 + $0x30] sm:$0xff]  ;;  %v180_v14 = vld [vmem:[%s447_s19 + $0x48] sm:$0xff] }
  0x14   : > { %365 = vmatprep.subr.bf16.mxu0 %v364_v6  ;;  %v182_v15 = vld [vmem:[%s447_s19 + $0x58] sm:$0xff]  ;;  %v370_v16 = vpack.c.bf16 %v177_v13, %v175_v12  ;;  %v179_v18 = vld [vmem:[%s447_s19 + $0x40] sm:$0xff]  ;;  %v181_v19 = vld [vmem:[%s447_s19 + $0x50] sm:$0xff] }
  0x15   : > { %367 = vmatpush1.bf16.msra.mxu0 %v366_v10  ;;  %v372_v17 = vpack.c.bf16 %v182_v15, %v180_v14  ;;  %v184_v20 = vld [vmem:[%s447_s19 + $0x68] sm:$0xff]  ;;  %v186_v21 = vld [vmem:[%s447_s19 + $0x78] sm:$0xff]  ;;  %v374_v22 = vpack.c.bf16 %v181_v19, %v179_v18  ;;  %v183_v24 = vld [vmem:[%s447_s19 + $0x60] sm:$0xff] }
  0x16   : > { %369 = vmatprep.subr.bf16.mxu0 %v368_v11  ;;  %v376_v23 = vpack.c.bf16 %v186_v21, %v184_v20  ;;  %v185_v25 = vld [vmem:[%s447_s19 + $0x70] sm:$0xff]  ;;  %v188_v26 = vld [vmem:[%s447_s19 + $0x88] sm:$0xff]  ;;  %v190_v27 = vld [vmem:[%s447_s19 + $0x98] sm:$0xff] }
  0x17   : > { %v378_v28 = vpack.c.bf16 %v185_v25, %v183_v24  ;;  %v380_v29 = vpack.c.bf16 %v190_v27, %v188_v26  ;;  %v187_v30 = vld [vmem:[%s447_s19 + $0x80] sm:$0xff]  ;;  %v189_v31 = vld [vmem:[%s447_s19 + $0x90] sm:$0xff]  ;;  %v192_v32 = vld [vmem:[%s447_s19 + $0xa8] sm:$0xff] }
  0x18   : > { %v194_v33 = vld [vmem:[%s447_s19 + $0xb8] sm:$0xff]  ;;  %v382_v34 = vpack.c.bf16 %v189_v31, %v187_v30  ;;  %v191_v36 = vld [vmem:[%s447_s19 + $0xa0] sm:$0xff]  ;;  %v193_v37 = vld [vmem:[%s447_s19 + $0xb0] sm:$0xff] }
  0x19   : > { %371 = vmatpush1.bf16.msra.mxu0 %v370_v16  ;;  %v384_v35 = vpack.c.bf16 %v194_v33, %v192_v32  ;;  %v386_v38 = vpack.c.bf16 %v193_v37, %v191_v36  ;;  %v196_v39 = vld [vmem:[%s447_s19 + $0xc8] sm:$0xf]  ;;  %v195_v40 = vld [vmem:[%s447_s19 + $0xc0] sm:$0xf] }
  0x1a   : > { %373 = vmatprep.subr.bf16.mxu0 %v372_v17 }
  0x1d   : > { %375 = vmatpush1.bf16.msra.mxu0 %v374_v22 }
  0x1e   : > { %377 = vmatprep.subr.bf16.mxu0 %v376_v23 }
  0x21   : > { %379 = vmatpush1.bf16.msra.mxu0 %v378_v28 }
  0x22   : > { %381 = vmatprep.subr.bf16.mxu0 %v380_v29 }
  0x25   : > { %383 = vmatpush1.bf16.msra.mxu0 %v382_v34 }
  0x26   : > { %385 = vmatprep.subr.bf16.mxu0 %v384_v35 }
  0x29   : > { %387 = vmatpush1.bf16.msra.mxu0 %v386_v38 }
  0x2a   : > { %358 = vmatprep.subr.msk.mxu0 %vm208_vm0, %v196_v39 }
  0x2d   : > { %359 = vmatpush1.msk.msra.mxu0 %vm208_vm0, %v195_v40 }
  0x2e   : > { %360 = vmatmul.mubr.msk.f32.vlgmr.msra.gmra.mrb[0].mxu0 %vm204_vm1, %v197_v41 }
  0x86   : > { %v202_v42 = vpop.permute.xlu0 %201 }
 0x101   : > { %v281_v43 = vpop.f32.mrb[0].mxu0 }
 0x102   : > { %v282_v44 = vadd.f32 %v281_v43, %v202_v42  ;;  %v283_v45 = vpop.f32.mrb[1].mxu0 }
 0x103   : > { %v284_v46 = vadd.f32 %v283_v45, %v202_v42 }
 0x104   : > { %vm286_vm2 = vcmp.gt.f32.partialorder %v282_v44, 0.0  ;;  %v288_v47 = vmul.f32 0.01, %v282_v44 }
 0x105   : > { %vm287_vm3 = vcmp.gt.f32.partialorder %v284_v46, 0.0  ;;  %v289_v48 = vmul.f32 0.01, %v284_v46 }
 0x106   : > { %v290_v49 = vsel %vm286_vm2, %v282_v44, %v288_v47 }
 0x107   : > { %292 = vst [vmem:[%s170_s25] sm:$0xff] %v290_v49  ;;  %v291_v50 = vsel %vm287_vm3, %v284_v46, %v289_v48 }
 0x108   : > { %294 = vst.msk [vmem:[%s170_s25 + $0x8] sm:$0xff] %vm293_vm4, %v291_v50 }
 0x109 PF: > { %s13_s12 = sadd.s32 1, %s406_s12  }
 0x10a   : > { %p10_p4 = scmp.ge.s32.totalorder %s13_s12, 6  }
 0x10c   :  { %12 = sbr.rel (!%p10_p4) target bundleno = 1 (0x1), region = 62 }

// kernel: conv_quality_estimator_forward.5
= control target key start
LH: loop header
LB: loop body
LE: loop exit
PB: predicated region body
PF: predicated region fallthrough
CT: control target
= control target key end

     0   :  { %vm717_vm0 = vmmov 0   ;;  %s1079_s1 = inlined_call_operand.vmem [shape: f32[512,128], index: 1, kind: input, shape index: {}]   ;;  %s1080_s0 = inlined_call_operand.vmem [shape: f32[8,512], index: 0, kind: input, shape index: {}]   ;;  %s1081_s2 = inlined_call_operand.vmem [shape: f32[128,128], index: 2, kind: input, shape index: {}]   ;;  %s1082_s4 = inlined_call_operand.vmem [shape: f32[128,128], index: 4, kind: input, shape index: {}]   ;;  %s1083_s3 = inlined_call_operand.vmem [shape: f32[1,128], index: 3, kind: input, shape index: {}]   ;;  %s1084_s5 = inlined_call_operand.vmem [shape: f32[1,128], index: 5, kind: input, shape index: {}]   ;;  %s1085_s6 = inlined_call_operand.vmem [shape: f32[8,128], index: 6, kind: output, shape index: {}]  }
   0x1   :  { %v43_v0 = vld [vmem:[%s1079_s1 + $0x80] sm:$0xff]  ;;  %v44_v1 = vld [vmem:[%s1079_s1 + $0x88] sm:$0xff]  ;;  %v45_v11 = vld [vmem:[%s1079_s1 + $0x90] sm:$0xff] }
   0x2   :  { %v75_v2 = vld [vmem:[%s1079_s1 + $0x180] sm:$0xff]  ;;  %v601_v3 = vpack.c.bf16 %v44_v1, %v43_v0  ;;  %v76_v4 = vld [vmem:[%s1079_s1 + $0x188] sm:$0xff]  ;;  %v46_v13 = vld [vmem:[%s1079_s1 + $0x98] sm:$0xff] }
   0x3   :  { %v27_v5 = vld [vmem:[%s1079_s1] sm:$0xff]  ;;  %v28_v6 = vld [vmem:[%s1079_s1 + $0x8] sm:$0xff]  ;;  %v633_v7 = vpack.c.bf16 %v76_v4, %v75_v2  ;;  %v77_v14 = vld [vmem:[%s1079_s1 + $0x190] sm:$0xff]  ;;  %v605_v16 = vpack.c.bf16 %v46_v13, %v45_v11 }
   0x4   :  { %v603_v8 = vpack.c.bf16 %v28_v6, %v27_v5  ;;  %v59_v9 = vld [vmem:[%s1079_s1 + $0x100] sm:$0xff]  ;;  %v60_v10 = vld [vmem:[%s1079_s1 + $0x108] sm:$0xff]  ;;  %602 = vmatprep.subr.bf16.mxu0 %v601_v3  ;;  %v78_v15 = vld [vmem:[%s1079_s1 + $0x198] sm:$0xff] }
   0x5   :  { %v635_v12 = vpack.c.bf16 %v60_v10, %v59_v9  ;;  %634 = vmatprep.subr.bf16.mxu1 %v633_v7  ;;  %v637_v17 = vpack.c.bf16 %v78_v15, %v77_v14  ;;  %v29_v18 = vld [vmem:[%s1079_s1 + $0x10] sm:$0xff]  ;;  %v30_v19 = vld [vmem:[%s1079_s1 + $0x18] sm:$0xff]  ;;  %v47_v23 = vld [vmem:[%s1079_s1 + $0xa0] sm:$0xff] }
   0x6   :  { %604 = vmatpush3.bf16.msra.mxu0 %v603_v8  ;;  %v61_v20 = vld [vmem:[%s1079_s1 + $0x110] sm:$0xff]  ;;  %v607_v21 = vpack.c.bf16 %v30_v19, %v29_v18  ;;  %v62_v22 = vld [vmem:[%s1079_s1 + $0x118] sm:$0xff]  ;;  %v48_v24 = vld [vmem:[%s1079_s1 + $0xa8] sm:$0xff] }
   0x7   :  { %636 = vmatpush3.bf16.msra.mxu1 %v635_v12  ;;  %606 = vmatprep.subr.bf16.mxu0 %v605_v16  ;;  %v639_v25 = vpack.c.bf16 %v62_v22, %v61_v20  ;;  %v609_v26 = vpack.c.bf16 %v48_v24, %v47_v23  ;;  %v79_v27 = vld [vmem:[%s1079_s1 + $0x1a0] sm:$0xff]  ;;  %v80_v28 = vld [vmem:[%s1079_s1 + $0x1a8] sm:$0xff]  ;;  %v49_v35 = vld [vmem:[%s1079_s1 + $0xb0] sm:$0xff] }
   0x8   :  { %638 = vmatprep.subr.bf16.mxu1 %v637_v17  ;;  %v31_v29 = vld [vmem:[%s1079_s1 + $0x20] sm:$0xff]  ;;  %v641_v30 = vpack.c.bf16 %v80_v28, %v79_v27  ;;  %v32_v31 = vld [vmem:[%s1079_s1 + $0x28] sm:$0xff]  ;;  %v50_v36 = vld [vmem:[%s1079_s1 + $0xb8] sm:$0xff] }
   0x9   :  { %v63_v32 = vld [vmem:[%s1079_s1 + $0x120] sm:$0xff]  ;;  %v64_v33 = vld [vmem:[%s1079_s1 + $0x128] sm:$0xff]  ;;  %v611_v34 = vpack.c.bf16 %v32_v31, %v31_v29  ;;  %v81_v37 = vld [vmem:[%s1079_s1 + $0x1b0] sm:$0xff]  ;;  %v613_v39 = vpack.c.bf16 %v50_v36, %v49_v35 }
   0xa   :  { %608 = vmatpush3.bf16.msra.mxu0 %v607_v21  ;;  %v643_v38 = vpack.c.bf16 %v64_v33, %v63_v32  ;;  %v82_v40 = vld [vmem:[%s1079_s1 + $0x1b8] sm:$0xff]  ;;  %v33_v41 = vld [vmem:[%s1079_s1 + $0x30] sm:$0xff]  ;;  %v51_v46 = vld [vmem:[%s1079_s1 + $0xc0] sm:$0xff] }
   0xb   :  { %640 = vmatpush3.bf16.msra.mxu1 %v639_v25  ;;  %610 = vmatprep.subr.bf16.mxu0 %v609_v26  ;;  %v34_v42 = vld [vmem:[%s1079_s1 + $0x38] sm:$0xff]  ;;  %v645_v43 = vpack.c.bf16 %v82_v40, %v81_v37  ;;  %v65_v44 = vld [vmem:[%s1079_s1 + $0x130] sm:$0xff]  ;;  %v52_v47 = vld [vmem:[%s1079_s1 + $0xc8] sm:$0xff] }
   0xc   :  { %642 = vmatprep.subr.bf16.mxu1 %v641_v30  ;;  %v66_v45 = vld [vmem:[%s1079_s1 + $0x138] sm:$0xff]  ;;  %v83_v48 = vld [vmem:[%s1079_s1 + $0x1c0] sm:$0xff]  ;;  %v84_v49 = vld [vmem:[%s1079_s1 + $0x1c8] sm:$0xff]  ;;  %v615_v50 = vpack.c.bf16 %v34_v42, %v33_v41  ;;  %v617_v52 = vpack.c.bf16 %v52_v47, %v51_v46 }
   0xd   :  { %v647_v51 = vpack.c.bf16 %v66_v45, %v65_v44  ;;  %v35_v53 = vld [vmem:[%s1079_s1 + $0x40] sm:$0xff]  ;;  %v36_v54 = vld [vmem:[%s1079_s1 + $0x48] sm:$0xff]  ;;  %v649_v56 = vpack.c.bf16 %v84_v49, %v83_v48  ;;  %v53_v58 = vld [vmem:[%s1079_s1 + $0xd0] sm:$0xff] }
   0xe   :  { %612 = vmatpush3.bf16.msra.mxu0 %v611_v34  ;;  %v67_v55 = vld [vmem:[%s1079_s1 + $0x140] sm:$0xff]  ;;  %v68_v57 = vld [vmem:[%s1079_s1 + $0x148] sm:$0xff]  ;;  %v54_v59 = vld [vmem:[%s1079_s1 + $0xd8] sm:$0xff]  ;;  %v619_v62 = vpack.c.bf16 %v36_v54, %v35_v53 }
   0xf   :  { %644 = vmatpush3.bf16.msra.mxu1 %v643_v38  ;;  %614 = vmatprep.subr.bf16.mxu0 %v613_v39  ;;  %v85_v60 = vld [vmem:[%s1079_s1 + $0x1d0] sm:$0xff]  ;;  %v86_v61 = vld [vmem:[%s1079_s1 + $0x1d8] sm:$0xff]  ;;  %v651_v63 = vpack.c.bf16 %v68_v57, %v67_v55  ;;  %v621_v0 = vpack.c.bf16 %v54_v59, %v53_v58  ;;  %v55_v6 = vld [vmem:[%s1079_s1 + $0xe0] sm:$0xff]  ;;  %v716_v39 = vmov 0.0|0.0  }
  0x10   :  { %646 = vmatprep.subr.bf16.mxu1 %v645_v43  ;;  %v37_v1 = vld [vmem:[%s1079_s1 + $0x50] sm:$0xff]  ;;  %v38_v2 = vld [vmem:[%s1079_s1 + $0x58] sm:$0xff]  ;;  %v653_v4 = vpack.c.bf16 %v86_v61, %v85_v60  ;;  %v56_v7 = vld [vmem:[%s1079_s1 + $0xe8] sm:$0xff]  ;;  %v718_v61 = vmov 0.0  }
  0x11   :  { %v69_v3 = vld [vmem:[%s1079_s1 + $0x150] sm:$0xff]  ;;  %v70_v5 = vld [vmem:[%s1079_s1 + $0x158] sm:$0xff]  ;;  %v87_v8 = vld [vmem:[%s1079_s1 + $0x1e0] sm:$0xff]  ;;  %v623_v10 = vpack.c.bf16 %v38_v2, %v37_v1  ;;  %v625_v14 = vpack.c.bf16 %v56_v7, %v55_v6 }
  0x12   :  { %616 = vmatpush3.bf16.msra.mxu0 %v615_v50  ;;  %v88_v9 = vld [vmem:[%s1079_s1 + $0x1e8] sm:$0xff]  ;;  %v39_v11 = vld [vmem:[%s1079_s1 + $0x60] sm:$0xff]  ;;  %v655_v13 = vpack.c.bf16 %v70_v5, %v69_v3  ;;  %v26_v17 = vld [vmem:[%s1080_s0 + $0x18] sm:$0xff] }
  0x13   :  { %648 = vmatpush3.bf16.msra.mxu1 %v647_v51  ;;  %618 = vmatprep.subr.bf16.mxu0 %v617_v52  ;;  %v40_v12 = vld [vmem:[%s1079_s1 + $0x68] sm:$0xff]  ;;  %v71_v15 = vld [vmem:[%s1079_s1 + $0x160] sm:$0xff]  ;;  %v657_v18 = vpack.c.bf16 %v88_v9, %v87_v8  ;;  %v57_v20 = vld [vmem:[%s1079_s1 + $0xf0] sm:$0xff] }
  0x14   :  { %650 = vmatprep.subr.bf16.mxu1 %v649_v56  ;;  %v24_v16 = vld [vmem:[%s1080_s0 + $0x8] sm:$0xff]  ;;  %v58_v21 = vld [vmem:[%s1079_s1 + $0xf8] sm:$0xff]  ;;  %v89_v22 = vld [vmem:[%s1079_s1 + $0x1f0] sm:$0xff]  ;;  %225 = vmatprep.mubr.f32.mxu1 %v26_v17  ;;  %v627_v24 = vpack.c.bf16 %v40_v12, %v39_v11 }
  0x15   :  { %v72_v19 = vld [vmem:[%s1079_s1 + $0x168] sm:$0xff]  ;;  %155 = vmatprep.mubr.f32.mxu0 %v24_v16  ;;  %v90_v23 = vld [vmem:[%s1079_s1 + $0x1f8] sm:$0xff]  ;;  %v629_v26 = vpack.c.bf16 %v58_v21, %v57_v20  ;;  %v41_v27 = vld [vmem:[%s1079_s1 + $0x70] sm:$0xff] }
  0x16   :  { %620 = vmatpush3.bf16.msra.mxu0 %v619_v62  ;;  %v659_v25 = vpack.c.bf16 %v72_v19, %v71_v15  ;;  %v42_v28 = vld [vmem:[%s1079_s1 + $0x78] sm:$0xff]  ;;  %v661_v29 = vpack.c.bf16 %v90_v23, %v89_v22  ;;  %v73_v30 = vld [vmem:[%s1079_s1 + $0x170] sm:$0xff]  ;;  %v231_v34 = vld [vmem:[%s1081_s2] sm:$0xff] }
  0x17   :  { %652 = vmatpush3.bf16.msra.mxu1 %v651_v63  ;;  %622 = vmatprep.subr.bf16.mxu0 %v621_v0  ;;  %v74_v31 = vld [vmem:[%s1079_s1 + $0x178] sm:$0xff]  ;;  %v631_v32 = vpack.c.bf16 %v42_v28, %v41_v27  ;;  %v232_v35 = vld [vmem:[%s1081_s2 + $0x8] sm:$0xff]  ;;  %v23_v36 = vld [vmem:[%s1080_s0] sm:$0xff] }
  0x18   :  { %654 = vmatprep.subr.bf16.mxu1 %v653_v4  ;;  %v663_v33 = vpack.c.bf16 %v74_v31, %v73_v30  ;;  %v666_v37 = vpack.c.bf16 %v232_v35, %v231_v34  ;;  %v25_v38 = vld [vmem:[%s1080_s0 + $0x10] sm:$0xff]  ;;  %v234_v41 = vld [vmem:[%s1081_s2 + $0x18] sm:$0xff]  ;;  %v235_v43 = vld [vmem:[%s1081_s2 + $0x20] sm:$0xff] }
  0x19   :  { %v233_v40 = vld [vmem:[%s1081_s2 + $0x10] sm:$0xff]  ;;  %v236_v44 = vld [vmem:[%s1081_s2 + $0x28] sm:$0xff]  ;;  %v238_v47 = vld [vmem:[%s1081_s2 + $0x38] sm:$0xff] }
  0x1a   :  { %624 = vmatpush3.bf16.msra.mxu0 %v623_v10  ;;  %v669_v42 = vpack.c.bf16 %v234_v41, %v233_v40  ;;  %v672_v45 = vpack.c.bf16 %v236_v44, %v235_v43  ;;  %v237_v46 = vld [vmem:[%s1081_s2 + $0x30] sm:$0xff]  ;;  %v239_v49 = vld [vmem:[%s1081_s2 + $0x40] sm:$0xff]  ;;  %v240_v50 = vld [vmem:[%s1081_s2 + $0x48] sm:$0xff] }
  0x1b   :  { %656 = vmatpush3.bf16.msra.mxu1 %v655_v13  ;;  %626 = vmatprep.subr.bf16.mxu0 %v625_v14  ;;  %v675_v48 = vpack.c.bf16 %v238_v47, %v237_v46  ;;  %v678_v51 = vpack.c.bf16 %v240_v50, %v239_v49  ;;  %v241_v52 = vld [vmem:[%s1081_s2 + $0x50] sm:$0xff]  ;;  %v242_v53 = vld [vmem:[%s1081_s2 + $0x58] sm:$0xff]  ;;  %v243_v55 = vld [vmem:[%s1081_s2 + $0x60] sm:$0xff] }
  0x1c   :  { %658 = vmatprep.subr.bf16.mxu1 %v657_v18  ;;  %v681_v54 = vpack.c.bf16 %v242_v53, %v241_v52  ;;  %v244_v56 = vld [vmem:[%s1081_s2 + $0x68] sm:$0xff]  ;;  %v245_v58 = vld [vmem:[%s1081_s2 + $0x70] sm:$0xff]  ;;  %v246_v59 = vld [vmem:[%s1081_s2 + $0x78] sm:$0xff] }
  0x1d   :  { %v684_v57 = vpack.c.bf16 %v244_v56, %v243_v55  ;;  %v687_v60 = vpack.c.bf16 %v246_v59, %v245_v58  ;;  %v327_v62 = vld [vmem:[%s1082_s4] sm:$0xff]  ;;  %v328_v63 = vld [vmem:[%s1082_s4 + $0x8] sm:$0xff]  ;;  %v329_v0 = vld [vmem:[%s1082_s4 + $0x10] sm:$0xff] }
  0x1e   :  { %628 = vmatpush3.bf16.msra.mxu0 %v627_v24  ;;  %v690_v1 = vpack.c.bf16 %v328_v63, %v327_v62  ;;  %v330_v2 = vld [vmem:[%s1082_s4 + $0x18] sm:$0xff]  ;;  %v331_v4 = vld [vmem:[%s1082_s4 + $0x20] sm:$0xff]  ;;  %v332_v5 = vld [vmem:[%s1082_s4 + $0x28] sm:$0xff] }
  0x1f   :  { %660 = vmatpush3.bf16.msra.mxu1 %v659_v25  ;;  %630 = vmatprep.subr.bf16.mxu0 %v629_v26  ;;  %v693_v3 = vpack.c.bf16 %v330_v2, %v329_v0  ;;  %v696_v6 = vpack.c.bf16 %v332_v5, %v331_v4  ;;  %v333_v7 = vld [vmem:[%s1082_s4 + $0x30] sm:$0xff]  ;;  %v334_v8 = vld [vmem:[%s1082_s4 + $0x38] sm:$0xff]  ;;  %v335_v10 = vld [vmem:[%s1082_s4 + $0x40] sm:$0xff] }
  0x20   :  { %662 = vmatprep.subr.bf16.mxu1 %v661_v29  ;;  %v699_v9 = vpack.c.bf16 %v334_v8, %v333_v7  ;;  %v336_v11 = vld [vmem:[%s1082_s4 + $0x48] sm:$0xff]  ;;  %v337_v13 = vld [vmem:[%s1082_s4 + $0x50] sm:$0xff]  ;;  %v338_v14 = vld [vmem:[%s1082_s4 + $0x58] sm:$0xff] }
  0x21   :  { %v702_v12 = vpack.c.bf16 %v336_v11, %v335_v10  ;;  %v705_v15 = vpack.c.bf16 %v338_v14, %v337_v13  ;;  %v339_v16 = vld [vmem:[%s1082_s4 + $0x60] sm:$0xff]  ;;  %v340_v17 = vld [vmem:[%s1082_s4 + $0x68] sm:$0xff]  ;;  %v341_v26 = vld [vmem:[%s1082_s4 + $0x70] sm:$0xff] }
  0x22   :  { %632 = vmatpush3.bf16.msra.mxu0 %v631_v32  ;;  %v708_v18 = vpack.c.bf16 %v340_v17, %v339_v16  ;;  %v342_v27 = vld [vmem:[%s1082_s4 + $0x78] sm:$0xff]  ;;  %v425_v29 = vld [vmem:[%s1083_s3] ss:$0 sm:$0xff] }
  0x23   :  { %664 = vmatpush3.bf16.msra.mxu1 %v663_v33  ;;  %665 = vmatprep.subr.bf16.mxu0 %v716_v39  ;;  %v711_v28 = vpack.c.bf16 %v342_v27, %v341_v26  ;;  %v426_v35 = vld [vmem:[%s1084_s5] ss:$0 sm:$0xff] }
  0x24   :  { %689 = vmatprep.subr.bf16.mxu1 %v716_v39 }
  0x25   :  { %156 = vmatmul.mubr.f32.vlgmr.msra.gmra.mrb[0].mxu0 %v23_v36 }
  0x26   :  { %226 = vmatmul.mubr.f32.vlgmr.msra.gmra.mrb[0].mxu1 %v25_v38  ;;  %667 = vmatpush3.bf16.msra.mxu0 %v666_v37 }
  0x27   :  { %668 = vmatprep.subr.bf16.mxu0 %v716_v39  ;;  %563 = vmatprep.mubr.msk.f32.mxu0 %vm717_vm0, %v718_v61 }
  0x28   :  { %598 = vmatprep.mubr.msk.f32.mxu1 %vm717_vm0, %v718_v61  ;;  %691 = vmatpush3.bf16.msra.mxu1 %v690_v1 }
  0x29   :  { %692 = vmatprep.subr.bf16.mxu1 %v716_v39 }
  0x2a   :  { %670 = vmatpush3.bf16.msra.mxu0 %v669_v42 }
  0x2b   :  { %671 = vmatprep.subr.bf16.mxu0 %v716_v39 }
  0x2c   :  { %694 = vmatpush3.bf16.msra.mxu1 %v693_v3 }
  0x2d   :  { %695 = vmatprep.subr.bf16.mxu1 %v716_v39 }
  0x2e   :  { %673 = vmatpush3.bf16.msra.mxu0 %v672_v45 }
  0x2f   :  { %674 = vmatprep.subr.bf16.mxu0 %v716_v39 }
  0x30   :  { %697 = vmatpush3.bf16.msra.mxu1 %v696_v6 }
  0x31   :  { %698 = vmatprep.subr.bf16.mxu1 %v716_v39 }
  0x32   :  { %676 = vmatpush3.bf16.msra.mxu0 %v675_v48 }
  0x33   :  { %677 = vmatprep.subr.bf16.mxu0 %v716_v39 }
  0x34   :  { %700 = vmatpush3.bf16.msra.mxu1 %v699_v9 }
  0x35   :  { %701 = vmatprep.subr.bf16.mxu1 %v716_v39 }
  0x36   :  { %679 = vmatpush3.bf16.msra.mxu0 %v678_v51 }
  0x37   :  { %680 = vmatprep.subr.bf16.mxu0 %v716_v39 }
  0x38   :  { %703 = vmatpush3.bf16.msra.mxu1 %v702_v12 }
  0x39   :  { %704 = vmatprep.subr.bf16.mxu1 %v716_v39 }
  0x3a   :  { %682 = vmatpush3.bf16.msra.mxu0 %v681_v54 }
  0x3b   :  { %683 = vmatprep.subr.bf16.mxu0 %v716_v39 }
  0x3c   :  { %706 = vmatpush3.bf16.msra.mxu1 %v705_v15 }
  0x3d   :  { %707 = vmatprep.subr.bf16.mxu1 %v716_v39 }
  0x3e   :  { %685 = vmatpush3.bf16.msra.mxu0 %v684_v57 }
  0x3f   :  { %686 = vmatprep.subr.bf16.mxu0 %v716_v39 }
  0x40   :  { %709 = vmatpush3.bf16.msra.mxu1 %v708_v18 }
  0x41   :  { %710 = vmatprep.subr.bf16.mxu1 %v716_v39 }
  0x42   :  { %688 = vmatpush3.bf16.msra.mxu0 %v687_v60 }
  0x44   :  { %712 = vmatpush3.bf16.msra.mxu1 %v711_v28 }
  0xf8   :  { %v459_v19 = vpop.f32.mrb[0].mxu0 }
  0xf9   :  { %v494_v20 = vpop.f32.mrb[0].mxu1  ;;  %v460_v21 = vpop.f32.mrb[1].mxu0 }
  0xfa   :  { %v461_v22 = vadd.f32 %v460_v21, %v459_v19  ;;  %v495_v23 = vpop.f32.mrb[1].mxu1 }
  0xfb   :  { %v496_v24 = vadd.f32 %v495_v23, %v494_v20 }
  0xfd   :  { %v228_v25 = vadd.f32 %v496_v24, %v461_v22 }
  0xff   :  { %564 = vmatmul.mubr.f32.vlgmr.msra.gmra.mrb[2].mxu0 %v228_v25 }
 0x1d2   :  { %v320_v30 = vpop.f32.mrb[2].mxu0 }
 0x1d3   :  { %v321_v31 = vadd.f32 %v425_v29, %v320_v30  ;;  %v565_v32 = vpop.f32.mrb[3].mxu0 }
 0x1d5   :  { %vm324_vm1 = vcmp.gt.f32.partialorder %v321_v31, 0.0  ;;  %v325_v33 = vmul.f32 0.01, %v321_v31 }
 0x1d7   :  { %v326_v34 = vsel %vm324_vm1, %v321_v31, %v325_v33 }
 0x1d8   :  { %599 = vmatmul.mubr.f32.vlgmr.msra.gmra.mrb[2].mxu1 %v326_v34 }
 0x2ab   :  { %v416_v36 = vpop.f32.mrb[2].mxu1 }
 0x2ac   :  { %v417_v37 = vadd.f32 %v426_v35, %v416_v36  ;;  %v600_v38 = vpop.f32.mrb[3].mxu1 }
 0x2ae   :  { %420 = vst [vmem:[%s1085_s6] sm:$0xff] %v417_v37 }

// kernel: conv_quality_estimator_forward.4
= control target key start
LH: loop header
LB: loop body
LE: loop exit
PB: predicated region body
PF: predicated region fallthrough
CT: control target
= control target key end

     0   :  { %s440_s12 = smov 0   ;;  %s512_s0 = inlined_call_operand.vmem [shape: f32[4,200,64], index: 0, kind: input, shape index: {}]   ;;  %s513_s1 = inlined_call_operand.vmem [shape: f32[8,200], index: 1, kind: input, shape index: {}]   ;;  %s514_s2 = inlined_call_operand.vmem [shape: f32[8,1], index: 2, kind: input, shape index: {}]   ;;  %s515_s3 = inlined_call_operand.vmem [shape: f32[4,8,64], index: 3, kind: output, shape index: {}]  }
   0x1 LB: > { %s348_s13 = sadd.s32 4294967295, %s415_s12   ;;  %p352_p0 = scmp.ge.s32.totalorder %s415_s12, 1  ;;  %s415_s12 = sphi %s440_s12, %s13_s12  }
   0x2   : > { %p137_p1 = scmp.lt.s32.totalorder %s415_s12, 5 }
   0x4   : > { %p138_p2 = pnand %p352_p0, %p137_p1 }
   0x5   : > { %p160_p3 = scmp.lt.s32.totalorder (!%p138_p2), %s348_s13, 3  ;;  %v195_v0 = vld [vmem:[%s513_s1 + $0x8] sm:$0xff] (!%p138_p2)  ;;  %vm202_vm0 = vcmask (!%p138_p2), 588800   ;;  %v417_v1 = vmov (!%p138_p2), 0.0|0.0   ;;  %v196_v2 = vld [vmem:[%s514_s2] sm:$0xff] (!%p138_p2)  ;;  %v418_v3 = vmov (!%p138_p2), 0  }
   0x6   : > { %141 = sbr.rel (%p138_p2) target bundleno = 596 (0x254), region = 32  ;;  %358 = vmatprep.subr.bf16.mxu0 (!%p138_p2), %v417_v1  ;;  %355 = vmatprep.mubr.msk.f32.mxu0 (!%p138_p2), %vm202_vm0, %v195_v0  ;;  %v419_v40 = vmov (!%p138_p2), 0.0   ;;  %v194_v42 = vld [vmem:[%s513_s1] sm:$0xff] (!%p138_p2)  ;;  %vm279_vm2 = vcmask (!%p138_p2), 523264  }
   0x7   : > { %406 = vset.pattern.permute.xlu0 (!%p138_p2), %v418_v3 }
   0x8   : > { %199 = vperm.xlu0 (!%p138_p2), %406, %v196_v2  }
   0xd   : > { %s517_s13 = smov (!%p160_p3, %s348_s13), 3 }
   0xe   : > { %s394_s18 = smul.u32 200, %s517_s13  ;;  %s354_s24 = sshll.u32 %s517_s13, 3 }
   0xf   : > { %s168_s27 = scalar_lea.vmem %s515_s3, %s354_s24 }
  0x10   : > { %s461_s21 = scalar_lea.vmem %s512_s0, %s394_s18 }
  0x11   : > { %v169_v4 = vld [vmem:[%s461_s21] sm:$0xff]  ;;  %v170_v5 = vld [vmem:[%s461_s21 + $0x8] sm:$0xff]  ;;  %v171_v6 = vld [vmem:[%s461_s21 + $0x10] sm:$0xff] }
  0x12   : > { %v359_v7 = vpack.c.bf16 %v170_v5, %v169_v4  ;;  %v172_v8 = vld [vmem:[%s461_s21 + $0x18] sm:$0xff]  ;;  %v173_v10 = vld [vmem:[%s461_s21 + $0x20] sm:$0xff]  ;;  %v174_v11 = vld [vmem:[%s461_s21 + $0x28] sm:$0xff] }
  0x13   : > { %v362_v9 = vpack.c.bf16 %v172_v8, %v171_v6  ;;  %v365_v12 = vpack.c.bf16 %v174_v11, %v173_v10  ;;  %v175_v13 = vld [vmem:[%s461_s21 + $0x30] sm:$0xff]  ;;  %v176_v14 = vld [vmem:[%s461_s21 + $0x38] sm:$0xff]  ;;  %v177_v16 = vld [vmem:[%s461_s21 + $0x40] sm:$0xff] }
  0x14   : > { %360 = vmatpush1.bf16.msra.mxu0 %v359_v7  ;;  %v368_v15 = vpack.c.bf16 %v176_v14, %v175_v13  ;;  %v178_v17 = vld [vmem:[%s461_s21 + $0x48] sm:$0xff]  ;;  %v179_v19 = vld [vmem:[%s461_s21 + $0x50] sm:$0xff]  ;;  %v180_v20 = vld [vmem:[%s461_s21 + $0x58] sm:$0xff] }
  0x15   : > { %361 = vmatprep.subr.bf16.mxu0 %v417_v1  ;;  %v371_v18 = vpack.c.bf16 %v178_v17, %v177_v16  ;;  %v374_v21 = vpack.c.bf16 %v180_v20, %v179_v19  ;;  %v181_v22 = vld [vmem:[%s461_s21 + $0x60] sm:$0xff]  ;;  %v182_v23 = vld [vmem:[%s461_s21 + $0x68] sm:$0xff]  ;;  %v183_v25 = vld [vmem:[%s461_s21 + $0x70] sm:$0xff] }
  0x16   : > { %v377_v24 = vpack.c.bf16 %v182_v23, %v181_v22  ;;  %v184_v26 = vld [vmem:[%s461_s21 + $0x78] sm:$0xff]  ;;  %v185_v28 = vld [vmem:[%s461_s21 + $0x80] sm:$0xff]  ;;  %v186_v29 = vld [vmem:[%s461_s21 + $0x88] sm:$0xff] }
  0x17   : > { %v380_v27 = vpack.c.bf16 %v184_v26, %v183_v25  ;;  %v383_v30 = vpack.c.bf16 %v186_v29, %v185_v28  ;;  %v187_v31 = vld [vmem:[%s461_s21 + $0x90] sm:$0xff]  ;;  %v188_v32 = vld [vmem:[%s461_s21 + $0x98] sm:$0xff]  ;;  %v189_v34 = vld [vmem:[%s461_s21 + $0xa0] sm:$0xff] }
  0x18   : > { %363 = vmatpush1.bf16.msra.mxu0 %v362_v9  ;;  %v386_v33 = vpack.c.bf16 %v188_v32, %v187_v31  ;;  %v190_v35 = vld [vmem:[%s461_s21 + $0xa8] sm:$0xff]  ;;  %v191_v37 = vld [vmem:[%s461_s21 + $0xb0] sm:$0xff]  ;;  %v192_v38 = vld [vmem:[%s461_s21 + $0xb8] sm:$0xff] }
  0x19   : > { %364 = vmatprep.subr.bf16.mxu0 %v417_v1  ;;  %v389_v36 = vpack.c.bf16 %v190_v35, %v189_v34  ;;  %v392_v39 = vpack.c.bf16 %v192_v38, %v191_v37  ;;  %v193_v41 = vld [vmem:[%s461_s21 + $0xc0] sm:$0xff] }
  0x1c   : > { %366 = vmatpush1.bf16.msra.mxu0 %v365_v12 }
  0x1d   : > { %367 = vmatprep.subr.bf16.mxu0 %v417_v1 }
  0x20   : > { %369 = vmatpush1.bf16.msra.mxu0 %v368_v15 }
  0x21   : > { %370 = vmatprep.subr.bf16.mxu0 %v417_v1 }
  0x24   : > { %372 = vmatpush1.bf16.msra.mxu0 %v371_v18 }
  0x25   : > { %373 = vmatprep.subr.bf16.mxu0 %v417_v1 }
  0x28   : > { %375 = vmatpush1.bf16.msra.mxu0 %v374_v21 }
  0x29   : > { %376 = vmatprep.subr.bf16.mxu0 %v417_v1 }
  0x2c   : > { %378 = vmatpush1.bf16.msra.mxu0 %v377_v24 }
  0x2d   : > { %379 = vmatprep.subr.bf16.mxu0 %v417_v1 }
  0x30   : > { %381 = vmatpush1.bf16.msra.mxu0 %v380_v27 }
  0x31   : > { %382 = vmatprep.subr.bf16.mxu0 %v417_v1 }
  0x34   : > { %384 = vmatpush1.bf16.msra.mxu0 %v383_v30 }
  0x35   : > { %385 = vmatprep.subr.bf16.mxu0 %v417_v1 }
  0x38   : > { %387 = vmatpush1.bf16.msra.mxu0 %v386_v33 }
  0x39   : > { %388 = vmatprep.subr.bf16.mxu0 %v417_v1 }
  0x3c   : > { %390 = vmatpush1.bf16.msra.mxu0 %v389_v36 }
  0x3d   : > { %391 = vmatprep.subr.bf16.mxu0 %v417_v1 }
  0x40   : > { %393 = vmatpush1.bf16.msra.mxu0 %v392_v39 }
  0x41   : > { %254 = vmatprep.subr.mxu0 %v419_v40 }
  0x44   : > { %255 = vmatpush1.msra.mxu0 %v193_v41 }
  0x45   : > { %271 = vmatmul.mubr.f32.vlgmr.msra.gmra.mrb[0].mxu0 %v194_v42 }
  0x87   : > { %v200_v43 = vpop.permute.xlu0 %199 }
 0x118   : > { %v272_v44 = vpop.f32.mrb[0].mxu0 }
 0x119   : > { %v273_v45 = vadd.f32 %v272_v44, %v200_v43  ;;  %v274_v46 = vpop.f32.mrb[1].mxu0 }
 0x11b   : > { %v277_v47 = vmul.f32 0.01, %v273_v45  ;;  %vm276_vm1 = vcmp.gt.f32.partialorder %v273_v45, 0.0 }
 0x11d   : > { %v278_v48 = vsel %vm276_vm1, %v273_v45, %v277_v47 }
 0x11e   : > { %v280_v49 = vsel %vm279_vm2, %v278_v48, 0.0 }
 0x11f   : > { %281 = vadd.xlane.f32.xlu0 %v280_v49 }
 0x1ac   : > { %v282_v50 = vpop.xlane.xlu0 %281 }
 0x1ad   : > { %v284_v51 = vmul.f32 0.015625, %v282_v50 }
 0x1af   : > { %v285_v52 = vsub.f32 %v278_v48, %v284_v51 }
 0x1b1   : > { %v286_v53 = vmul.f32 %v285_v52, %v285_v52 }
 0x1b3   : > { %v287_v54 = vsel %vm279_vm2, %v286_v53, 0.0 }
 0x1b4   : > { %288 = vadd.xlane.f32.xlu1 %v287_v54 }
 0x241   : > { %v289_v55 = vpop.xlane.xlu1 %288 }
 0x242   : > { %v290_v56 = vmul.f32 0.015625, %v289_v55 }
 0x244   : > { %v291_v57 = vadd.f32 1e-05, %v290_v56 }
 0x246   : > { %407 = vrsqrt.f32 %v291_v57 }
 0x250   : > { %v408_v58 = vpop.eup %407 }
 0x251   : > { %v293_v59 = vmul.f32 %v408_v58, %v285_v52 }
 0x253   : > { %294 = vst.msk [vmem:[%s168_s27] sm:$0xff] %vm279_vm2, %v293_v59 }
 0x254 PF: > { %s13_s12 = sadd.s32 1, %s415_s12  }
 0x255   : > { %p10_p4 = scmp.ge.s32.totalorder %s13_s12, 6  }
 0x257   :  { %12 = sbr.rel (!%p10_p4) target bundleno = 1 (0x1), region = 62 }

</bundles_post_ra>
